<compile_context>
chip_gen: v7x
topology: tpu7x:2x2x1
jax: 0.10.0
libtpu: 0.0.40
codegen_flags: <defaults>
</compile_context>

<pallas_src>
import functools

import jax
import jax.numpy as jnp
from jax.experimental import pallas as pl
from jax.experimental.pallas import tpu as pltpu


# ----------------------------------------------------------------------------
# Fused per-layer kernel (one grid step == `block_b` batch elements)
# ----------------------------------------------------------------------------

def _encoder_layer_kernel(src_ref, coord_ref, w1_ref, w2_ref, wk_ref, bias_ref,
                          o_ref, *, block_b, key_dim):
    """relu(InstanceNorm1d(src + attn(src + posembed(coord)))) in (C, N) lane-dense layout.

    src  : (bb, C, N)     f32 tokens, channels-first
    coord: (bb, P+1, N)   f32 coordinates + constant-1 channel (bias fold)
    w1   : (C, P+1) bf16  pos-embed conv1 weight with conv1 bias folded in
    w2   : (C, C)   bf16  pos-embed conv2 weight
    wk   : (K, C)   bf16  shared q/k projection (n_head=1)
    bias : (C, 2)   f32   column 0 = conv2 bias, column 1 = WK bias (zero padded to C)
    out  : (bb, C, N)     f32
    """
    # hoist shared weights / biases once per grid step
    w1 = w1_ref[...]                                  # (C, P+1) bf16
    w2 = w2_ref[...]                                  # (C, C)   bf16
    wk = wk_ref[...]                                  # (K, C)   bf16
    pb2 = bias_ref[:, 0:1]                            # (C, 1)   f32, broadcasts over N
    bk = bias_ref[:key_dim, 1:2]                      # (K, 1)   f32

    def body(i, carry):
        # --- PositionEmbeddingLearned: Conv1d(k=1)+bias(folded) -> BN(identity) -> ReLU -> Conv1d(k=1)
        coord = coord_ref[i].astype(jnp.bfloat16)     # (P+1, N)
        h = jnp.maximum(jnp.dot(w1, coord, preferred_element_type=jnp.float32), 0.0)
        pos = jnp.dot(w2, h.astype(jnp.bfloat16),
                      preferred_element_type=jnp.float32) + pb2            # (C, N)

        # --- query = key = value = src + pos_embed (kept only as bf16 value; src re-read later)
        xb = (src_ref[i] + pos).astype(jnp.bfloat16)                        # (C, N)

        # --- single-head RelationUnit attention; q == k == v fast path:
        #     shared WK projection + L2 normalize computed ONCE.
        p = jnp.dot(wk, xb, preferred_element_type=jnp.float32) + bk        # (K, N)
        inv_norm = jax.lax.rsqrt(
            jnp.maximum(jnp.sum(p * p, axis=0, keepdims=True), 1e-24))      # (1, N)
        pn = (p * inv_norm).astype(jnp.bfloat16)                            # unit columns

        # logits[q, n] = <pn[:, q], pn[:, n]>   (symmetric, entries in [-1, 1] up to bf16 noise)
        logits = jax.lax.dot_general(
            pn, pn, (((0,), (0,)), ((), ())),
            preferred_element_type=jnp.float32)                             # (N, N)

        # softmax(30 * logits): constant row-max (diagonal cosine == 1), temperature folded
        # into the exp argument; probabilities normalized AFTER the value matmul.
        e = jnp.exp((logits - 1.0) * 30.0)                                  # (N, N) f32
        l = jnp.sum(e, axis=0, keepdims=True)                               # (1, N) row sums (e symmetric)

        # src2[c, q] = (1/l[q]) * sum_k x[c, k] * e[k, q]   — canonical matmul, no transpose
        src2 = jax.lax.dot_general(
            xb, e.astype(jnp.bfloat16), (((1,), (0,)), ((), ())),
            preferred_element_type=jnp.float32)                             # (C, N)
        src2 = src2 * pl.reciprocal(l, approx=True)

        # --- residual + InstanceNorm1d over the point axis (per channel) + ReLU
        y = src_ref[i] + src2
        mean = jnp.mean(y, axis=-1, keepdims=True)                          # (C, 1)
        var = jnp.mean(jnp.square(y - mean), axis=-1, keepdims=True)        # (C, 1)
        o_ref[i] = jnp.maximum((y - mean) * jax.lax.rsqrt(var + 1e-5), 0.0)
        return carry

    # fori_loop (not a Python for) so each batch element is a real loop boundary
    # (bounds live ranges -> no cross-iteration vreg spill when the grid is collapsed).
    jax.lax.fori_loop(0, block_b, body, 0)


# ----------------------------------------------------------------------------
# Wrapper — channels-first (B, C, N) in/out; transpose once at model entry/exit.
# ----------------------------------------------------------------------------

def _single_tensorcore_device() -> bool:
    """True for TPU generations with one TensorCore per device (v5e / v6e)."""
    try:
        kind = jax.devices()[0].device_kind.lower()
    except Exception:
        return False
    return any(t in kind for t in ("v5e", "v5 lite", "v5litepod", "v6e", "v6 lite"))


def transformer_encoder_layer(src_bcn, coord_bpn, params, *, block_b=None):
    """src_bcn: (B, C, N) f32, coord_bpn: (B, P, N) f32 coordinates, params from pack_params."""
    B, C, N = src_bcn.shape
    P = coord_bpn.shape[1]
    K = params["wk"].shape[0]
    p_aug = params["w1"].shape[1]
    assert p_aug == P + 1, "w1 must carry the folded conv1 bias as its last column"

    # grid strategy: one batch element per step on multi-TC chips (v7x: both cores busy),
    # collapsed grid (whole batch in one invocation) on single-TC v5e/v6e.
    if block_b is None:
        block_b = B if _single_tensorcore_device() else 1
    if B % block_b:
        block_b = 1
    grid = (B // block_b,)

    # append a constant-1 coordinate channel so the conv1 bias rides the first matmul
    coord_aug = jnp.concatenate(
        [coord_bpn, jnp.ones((B, 1, N), coord_bpn.dtype)], axis=1)          # (B, P+1, N)

    flops = 2 * B * N * (C * p_aug + C * C + K * C + N * K + N * C)
    bytes_accessed = (
        4 * (src_bcn.size + coord_aug.size + B * C * N + params["bias"].size)
        + 2 * (params["w1"].size + params["w2"].size + params["wk"].size))
    cost = pl.CostEstimate(flops=flops, transcendentals=B * N * N,
                           bytes_accessed=bytes_accessed)

    kernel = functools.partial(_encoder_layer_kernel, block_b=block_b, key_dim=K)

    return pl.pallas_call(
        kernel,
        out_shape=jax.ShapeDtypeStruct((B, C, N), jnp.float32),
        grid=grid,
        in_specs=[
            pl.BlockSpec((block_b, C, N), lambda g: (g, 0, 0)),      # src (channels-first)
            pl.BlockSpec((block_b, p_aug, N), lambda g: (g, 0, 0)),  # coords + ones channel
            pl.BlockSpec((C, p_aug), lambda g: (0, 0)),              # pos-embed w1 (bias folded)
            pl.BlockSpec((C, C), lambda g: (0, 0)),                  # pos-embed w2
            pl.BlockSpec((K, C), lambda g: (0, 0)),                  # attention WK
            pl.BlockSpec((C, 2), lambda g: (0, 0)),                  # packed biases (pb2 | bk)
        ],
        out_specs=pl.BlockSpec((block_b, C, N), lambda g: (g, 0, 0)),
        compiler_params=pltpu.CompilerParams(dimension_semantics=("parallel",)),
        cost_estimate=cost,
    )(src_bcn, coord_aug, params["w1"], params["w2"], params["wk"], params["bias"])


# ----------------------------------------------------------------------------
# Parameter packing (logical f32 weights -> kernel operands)
# ----------------------------------------------------------------------------

def pack_params(pw1, pb1, pw2, pb2, wk, bk):
    """pw1:(C,P) pb1:(C,) pw2:(C,C) pb2:(C,) wk:(K,C) bk:(K,), all f32."""
    C = pw1.shape[0]
    K = wk.shape[0]
    w1_aug = jnp.concatenate([pw1, pb1[:, None]], axis=1).astype(jnp.bfloat16)  # (C, P+1)
    bias = jnp.zeros((C, 2), jnp.float32)
    bias = bias.at[:, 0].set(pb2)
    bias = bias.at[:K, 1].set(bk)
    return dict(w1=w1_aug,
                w2=pw2.astype(jnp.bfloat16),
                wk=wk.astype(jnp.bfloat16),
                bias=bias)


# ----------------------------------------------------------------------------
# Pure-JAX f32 reference (same math, exact precision) for a sanity check
# ----------------------------------------------------------------------------

def reference_forward(src, coord, pw1, pb1, pw2, pb2, wk, bk):
    h = jnp.maximum(jnp.einsum("cp,bpn->bcn", pw1, coord) + pb1[None, :, None], 0.0)
    pos = jnp.einsum("cd,bdn->bcn", pw2, h) + pb2[None, :, None]
    x = src + pos
    p = jnp.einsum("kc,bcn->bkn", wk, x) + bk[None, :, None]
    pn = p / jnp.maximum(jnp.linalg.norm(p, axis=1, keepdims=True), 1e-12)
    logits = 30.0 * jnp.einsum("bkq,bkn->bqn", pn, pn)
    attn = jax.nn.softmax(logits, axis=-1)
    src2 = jnp.einsum("bqk,bck->bcq", attn, x)
    y = src + src2
    mean = jnp.mean(y, axis=-1, keepdims=True)
    var = jnp.mean(jnp.square(y - mean), axis=-1, keepdims=True)
    return jnp.maximum((y - mean) * jax.lax.rsqrt(var + 1e-5), 0.0)


# ----------------------------------------------------------------------------
# Main
# ----------------------------------------------------------------------------

if __name__ == "__main__":
    B, C, N = 2, 64, 128          # batch, d_model, points per cloud
    P, K = 3, 32                  # coord dim, key_feature_dim
    scale = 0.05

    key = jax.random.PRNGKey(0)
    ks = jax.random.split(key, 8)

    # channels-first activations: the per-model transpose from PyTorch's (N, B, C)
    # happens once at stack entry/exit, not per layer.
    src = jax.random.normal(ks[0], (B, C, N), jnp.float32)
    coord = jax.random.uniform(ks[1], (B, P, N), jnp.float32)

    pw1 = jax.random.normal(ks[2], (C, P), jnp.float32) * scale
    pb1 = jax.random.normal(ks[3], (C,), jnp.float32) * scale
    pw2 = jax.random.normal(ks[4], (C, C), jnp.float32) * scale
    pb2 = jax.random.normal(ks[5], (C,), jnp.float32) * scale
    wk = jax.random.normal(ks[6], (K, C), jnp.float32) * scale
    bk = jax.random.normal(ks[7], (K,), jnp.float32) * scale

    params = pack_params(pw1, pb1, pw2, pb2, wk, bk)

    fwd = jax.jit(transformer_encoder_layer)
    out = jax.block_until_ready(fwd(src, coord, params))

    assert out.shape == (B, C, N)
    assert bool(jnp.all(jnp.isfinite(out)))

    ref = reference_forward(src, coord, pw1, pb1, pw2, pb2, wk, bk)
    err = float(jnp.max(jnp.abs(out - ref)))
    # bf16 MXU inputs + approx reciprocal -> small deviation from exact f32 math
    assert err < 0.25, f"max abs err vs f32 reference: {err}"

    print("KERNEL_OK")
</pallas_src>

<mosaic_0001>
module attributes {stable_mosaic.version = 11 : i64} {
  func.func @_encoder_layer_kernel(%arg0: i32, %arg1: memref<1x64x128xf32, #tpu.memory_space<vmem>>, %arg2: memref<1x4x128xf32, #tpu.memory_space<vmem>>, %arg3: memref<64x4xbf16, #tpu.memory_space<vmem>>, %arg4: memref<64x64xbf16, #tpu.memory_space<vmem>>, %arg5: memref<32x64xbf16, #tpu.memory_space<vmem>>, %arg6: memref<64x2xf32, #tpu.memory_space<vmem>>, %arg7: memref<1x64x128xf32, #tpu.memory_space<vmem>>) attributes {dimension_semantics = [#tpu.dimension_semantics<parallel>], iteration_bounds = array<i64: 2>, scalar_prefetch = 0 : i64, scratch_operands = 0 : i64, tpu.core_type = #tpu.core_type<tc>, window_params = [{transform_indices = @transform_0, window_bounds = array<i64: 1, 64, 128>}, {transform_indices = @transform_1, window_bounds = array<i64: 1, 4, 128>}, {pipeline_mode = #tpu.pipeline_mode<synchronous>, transform_indices = @transform_2, window_bounds = array<i64: 64, 4>}, {pipeline_mode = #tpu.pipeline_mode<synchronous>, transform_indices = @transform_3, window_bounds = array<i64: 64, 64>}, {pipeline_mode = #tpu.pipeline_mode<synchronous>, transform_indices = @transform_4, window_bounds = array<i64: 32, 64>}, {pipeline_mode = #tpu.pipeline_mode<synchronous>, transform_indices = @transform_5, window_bounds = array<i64: 64, 2>}, {transform_indices = @transform_6, window_bounds = array<i64: 1, 64, 128>}]} {
    %c0 = arith.constant 0 : index
    %c0_0 = arith.constant 0 : index
    %0 = vector.load %arg3[%c0, %c0_0] : memref<64x4xbf16, #tpu.memory_space<vmem>>, vector<64x4xbf16>
    %c0_1 = arith.constant 0 : index
    %c0_2 = arith.constant 0 : index
    %1 = vector.load %arg4[%c0_1, %c0_2] : memref<64x64xbf16, #tpu.memory_space<vmem>>, vector<64x64xbf16>
    %c0_3 = arith.constant 0 : index
    %c0_4 = arith.constant 0 : index
    %2 = vector.load %arg5[%c0_3, %c0_4] : memref<32x64xbf16, #tpu.memory_space<vmem>>, vector<32x64xbf16>
    %c0_5 = arith.constant 0 : index
    %c0_6 = arith.constant 0 : index
    %3 = vector.load %arg6[%c0_5, %c0_6] : memref<64x2xf32, #tpu.memory_space<vmem>>, vector<64x1xf32>
    %c0_7 = arith.constant 0 : index
    %c1 = arith.constant 1 : index
    %4 = vector.load %arg6[%c0_7, %c1] : memref<64x2xf32, #tpu.memory_space<vmem>>, vector<32x1xf32>
    %c0_i32 = arith.constant 0 : i32
    %5 = arith.index_cast %c0_i32 : i32 to index
    %c0_8 = arith.constant 0 : index
    %c0_9 = arith.constant 0 : index
    %6 = vector.load %arg2[%5, %c0_8, %c0_9] : memref<1x4x128xf32, #tpu.memory_space<vmem>>, vector<1x4x128xf32>
    %7 = vector.shape_cast %6 : vector<1x4x128xf32> to vector<4x128xf32>
    %8 = arith.truncf %7 : vector<4x128xf32> to vector<4x128xbf16>
    %cst = arith.constant dense<0.000000e+00> : vector<64x128xf32>
    %9 = tpu.matmul %0, %8, %cst {dimension_numbers = #tpu.dot_dimension_numbers<[1], [0], [0], [1], [0, 0, 1, 1], [], []>} : vector<64x4xbf16>, vector<4x128xbf16>, vector<64x128xf32> -> vector<64x128xf32>
    %cst_10 = arith.constant 0.000000e+00 : f32
    %10 = vector.broadcast %cst_10 : f32 to vector<64x128xf32>
    %11 = arith.maximumf %9, %10 : vector<64x128xf32>
    %12 = arith.truncf %11 : vector<64x128xf32> to vector<64x128xbf16>
    %cst_11 = arith.constant dense<0.000000e+00> : vector<64x128xf32>
    %13 = tpu.matmul %1, %12, %cst_11 {dimension_numbers = #tpu.dot_dimension_numbers<[1], [0], [0], [1], [0, 0, 1, 1], [], []>} : vector<64x64xbf16>, vector<64x128xbf16>, vector<64x128xf32> -> vector<64x128xf32>
    %14 = vector.broadcast %3 : vector<64x1xf32> to vector<64x128xf32>
    %15 = arith.addf %13, %14 : vector<64x128xf32>
    %16 = arith.index_cast %c0_i32 : i32 to index
    %c0_12 = arith.constant 0 : index
    %c0_13 = arith.constant 0 : index
    %17 = vector.load %arg1[%16, %c0_12, %c0_13] : memref<1x64x128xf32, #tpu.memory_space<vmem>>, vector<1x64x128xf32>
    %18 = vector.shape_cast %17 : vector<1x64x128xf32> to vector<64x128xf32>
    %19 = arith.addf %18, %15 : vector<64x128xf32>
    %20 = arith.truncf %19 : vector<64x128xf32> to vector<64x128xbf16>
    %cst_14 = arith.constant dense<0.000000e+00> : vector<32x128xf32>
    %21 = tpu.matmul %2, %20, %cst_14 {dimension_numbers = #tpu.dot_dimension_numbers<[1], [0], [0], [1], [0, 0, 1, 1], [], []>} : vector<32x64xbf16>, vector<64x128xbf16>, vector<32x128xf32> -> vector<32x128xf32>
    %22 = vector.broadcast %4 : vector<32x1xf32> to vector<32x128xf32>
    %23 = arith.addf %21, %22 : vector<32x128xf32>
    %24 = arith.mulf %23, %23 : vector<32x128xf32>
    %cst_15 = arith.constant dense<0.000000e+00> : vector<128xf32>
    %25 = vector.multi_reduction <add>, %24, %cst_15 [0] : vector<32x128xf32> to vector<128xf32>
    %26 = vector.shape_cast %25 : vector<128xf32> to vector<1x128xf32>
    %cst_16 = arith.constant 1.000000e-24 : f32
    %27 = vector.broadcast %cst_16 : f32 to vector<1x128xf32>
    %28 = arith.maximumf %26, %27 : vector<1x128xf32>
    %29 = math.rsqrt %28 : vector<1x128xf32>
    %30 = vector.broadcast %29 : vector<1x128xf32> to vector<32x128xf32>
    %31 = arith.mulf %23, %30 : vector<32x128xf32>
    %32 = arith.truncf %31 : vector<32x128xf32> to vector<32x128xbf16>
    %cst_17 = arith.constant dense<0.000000e+00> : vector<128x128xf32>
    %33 = tpu.matmul %32, %32, %cst_17 {dimension_numbers = #tpu.dot_dimension_numbers<[0], [0], [1], [1], [0, 1, 1, 1], [], []>} : vector<32x128xbf16>, vector<32x128xbf16>, vector<128x128xf32> -> vector<128x128xf32>
    %cst_18 = arith.constant 1.000000e+00 : f32
    %34 = vector.broadcast %cst_18 : f32 to vector<128x128xf32>
    %35 = arith.subf %33, %34 : vector<128x128xf32>
    %cst_19 = arith.constant 3.000000e+01 : f32
    %36 = vector.broadcast %cst_19 : f32 to vector<128x128xf32>
    %37 = arith.mulf %35, %36 : vector<128x128xf32>
    %38 = math.exp %37 : vector<128x128xf32>
    %cst_20 = arith.constant dense<0.000000e+00> : vector<128xf32>
    %39 = vector.multi_reduction <add>, %38, %cst_20 [0] : vector<128x128xf32> to vector<128xf32>
    %40 = vector.shape_cast %39 : vector<128xf32> to vector<1x128xf32>
    %41 = arith.truncf %38 : vector<128x128xf32> to vector<128x128xbf16>
    %cst_21 = arith.constant dense<0.000000e+00> : vector<64x128xf32>
    %42 = tpu.matmul %20, %41, %cst_21 {dimension_numbers = #tpu.dot_dimension_numbers<[1], [0], [0], [1], [0, 0, 1, 1], [], []>} : vector<64x128xbf16>, vector<128x128xbf16>, vector<64x128xf32> -> vector<64x128xf32>
    %43 = tpu.reciprocal %40 {approx = true} : vector<1x128xf32> -> vector<1x128xf32>
    %44 = vector.broadcast %43 : vector<1x128xf32> to vector<64x128xf32>
    %45 = arith.mulf %42, %44 : vector<64x128xf32>
    %46 = arith.index_cast %c0_i32 : i32 to index
    %c0_22 = arith.constant 0 : index
    %c0_23 = arith.constant 0 : index
    %47 = vector.load %arg1[%46, %c0_22, %c0_23] : memref<1x64x128xf32, #tpu.memory_space<vmem>>, vector<1x64x128xf32>
    %48 = vector.shape_cast %47 : vector<1x64x128xf32> to vector<64x128xf32>
    %49 = arith.addf %48, %45 : vector<64x128xf32>
    %cst_24 = arith.constant dense<0.000000e+00> : vector<64xf32>
    %50 = vector.multi_reduction <add>, %49, %cst_24 [1] : vector<64x128xf32> to vector<64xf32>
    %51 = vector.shape_cast %50 : vector<64xf32> to vector<64x1xf32>
    %cst_25 = arith.constant 1.280000e+02 : f32
    %52 = vector.broadcast %cst_25 : f32 to vector<64x1xf32>
    %53 = arith.divf %51, %52 : vector<64x1xf32>
    %54 = vector.broadcast %53 : vector<64x1xf32> to vector<64x128xf32>
    %55 = arith.subf %49, %54 : vector<64x128xf32>
    %56 = arith.mulf %55, %55 : vector<64x128xf32>
    %cst_26 = arith.constant dense<0.000000e+00> : vector<64xf32>
    %57 = vector.multi_reduction <add>, %56, %cst_26 [1] : vector<64x128xf32> to vector<64xf32>
    %58 = vector.shape_cast %57 : vector<64xf32> to vector<64x1xf32>
    %cst_27 = arith.constant 1.280000e+02 : f32
    %59 = vector.broadcast %cst_27 : f32 to vector<64x1xf32>
    %60 = arith.divf %58, %59 : vector<64x1xf32>
    %61 = vector.broadcast %53 : vector<64x1xf32> to vector<64x128xf32>
    %62 = arith.subf %49, %61 : vector<64x128xf32>
    %cst_28 = arith.constant 9.99999974E-6 : f32
    %63 = vector.broadcast %cst_28 : f32 to vector<64x1xf32>
    %64 = arith.addf %60, %63 : vector<64x1xf32>
    %65 = math.rsqrt %64 : vector<64x1xf32>
    %66 = vector.broadcast %65 : vector<64x1xf32> to vector<64x128xf32>
    %67 = arith.mulf %62, %66 : vector<64x128xf32>
    %cst_29 = arith.constant 0.000000e+00 : f32
    %68 = vector.broadcast %cst_29 : f32 to vector<64x128xf32>
    %69 = arith.maximumf %67, %68 : vector<64x128xf32>
    %70 = arith.index_cast %c0_i32 : i32 to index
    %c0_30 = arith.constant 0 : index
    %c0_31 = arith.constant 0 : index
    %71 = vector.load %arg7[%70, %c0_30, %c0_31] : memref<1x64x128xf32, #tpu.memory_space<vmem>>, vector<1x64x128xf32>
    %72 = vector.shape_cast %71 : vector<1x64x128xf32> to vector<64x128xf32>
    %73 = vector.shape_cast %69 : vector<64x128xf32> to vector<1x64x128xf32>
    tpu.vector_store %arg7[%70, %c0_30, %c0_31], %73 {strides = array<i32>} : memref<1x64x128xf32, #tpu.memory_space<vmem>>, vector<1x64x128xf32>,
    %c1_i32 = arith.constant 1 : i32
    return
  }
  func.func @transform_0(%arg0: i32) -> (i32, i32, i32) {
    %c0_i32 = arith.constant 0 : i32
    %c0_i32_0 = arith.constant 0 : i32
    %c0_i32_1 = arith.constant 0 : i32
    return %arg0, %c0_i32, %c0_i32_0 : i32, i32, i32
  }
  func.func @transform_1(%arg0: i32) -> (i32, i32, i32) {
    %c0_i32 = arith.constant 0 : i32
    %c0_i32_0 = arith.constant 0 : i32
    %c0_i32_1 = arith.constant 0 : i32
    return %arg0, %c0_i32, %c0_i32_0 : i32, i32, i32
  }
  func.func @transform_2(%arg0: i32) -> (i32, i32) {
    %c0_i32 = arith.constant 0 : i32
    %c0_i32_0 = arith.constant 0 : i32
    %c0_i32_1 = arith.constant 0 : i32
    return %c0_i32, %c0_i32_0 : i32, i32
  }
  func.func @transform_3(%arg0: i32) -> (i32, i32) {
    %c0_i32 = arith.constant 0 : i32
    %c0_i32_0 = arith.constant 0 : i32
    %c0_i32_1 = arith.constant 0 : i32
    return %c0_i32, %c0_i32_0 : i32, i32
  }
  func.func @transform_4(%arg0: i32) -> (i32, i32) {
    %c0_i32 = arith.constant 0 : i32
    %c0_i32_0 = arith.constant 0 : i32
    %c0_i32_1 = arith.constant 0 : i32
    return %c0_i32, %c0_i32_0 : i32, i32
  }
  func.func @transform_5(%arg0: i32) -> (i32, i32) {
    %c0_i32 = arith.constant 0 : i32
    %c0_i32_0 = arith.constant 0 : i32
    %c0_i32_1 = arith.constant 0 : i32
    return %c0_i32, %c0_i32_0 : i32, i32
  }
  func.func @transform_6(%arg0: i32) -> (i32, i32, i32) {
    %c0_i32 = arith.constant 0 : i32
    %c0_i32_0 = arith.constant 0 : i32
    %c0_i32_1 = arith.constant 0 : i32
    return %arg0, %c0_i32, %c0_i32_0 : i32, i32, i32
  }
}

</mosaic_0001>

<bundles_post_ra>
// kernel: transformer_encoder_layer.1
= control target key start
LH: loop header
LB: loop body
LE: loop exit
PB: predicated region body
PF: predicated region fallthrough
CT: control target
= control target key end

     0   :  { %11 = vsyncpa [#allocation3], 0  ;;  %s1954_s0 = inlined_call_operand.vmem [shape: f32[2,64,128], index: 0, kind: input, shape index: {}]   ;;  %s1955_s1 = inlined_call_operand.vmem [shape: f32[2,4,128], index: 1, kind: input, shape index: {}]   ;;  %s1956_s2 = inlined_call_operand.vmem [shape: bf16[64,4], index: 2, kind: input, shape index: {}]   ;;  %s1957_s3 = inlined_call_operand.hbm [shape: bf16[64,64], index: 3, kind: input, shape index: {}]   ;;  %s1958_s4 = inlined_call_operand.vmem [shape: bf16[32,64], index: 4, kind: input, shape index: {}]   ;;  %s1959_s5 = inlined_call_operand.vmem [shape: f32[64,2], index: 5, kind: input, shape index: {}]   ;;  %s1960_s6 = inlined_call_operand.hbm [shape: f32[2,64,128], index: 6, kind: output, shape index: {}]  }
   0x1   :  { %12 = vsyncpa [#allocation4], 0 }
   0x2   :  { %14 = vsyncpa [#allocation4 + $0x1], 0  ;;  %s1651_s21 = smov 0   ;;  %s1653_s22 = smov 0  }
   0x3   :  { %s1655_s23 = smov 0   ;;  %s1657_s24 = smov 0  }
   0x4 LB: > { %s1672_s25 = sadd.s32 4294967295, %s1606_s24   ;;  %s1205_s26 = sadd.s32 4294967294, %s1606_s24   ;;  %s1606_s24 = sphi %s1657_s24, %s1976_s24   ;;  %s1602_s23 = sphi %s1655_s23, %s1975_s23   ;;  %s1598_s22 = sphi %s1653_s22, %s1974_s22   ;;  %s1594_s21 = sphi %s1651_s21, %s1973_s21  }
   0x5   : > { %s1676_s27 = sadd.s32 1, %s1606_s24   ;;  %s163_s28 = sadd.s32 1, %s1602_s23 }
   0x6   : > { %s160_s29 = ssub.s32 %s1606_s24, %s1676_s27  ;;  %p173_p0 = scmp.ne.s32.totalorder %s1602_s23, %s1598_s22 }
   0x7   : > { %p161_p1 = scmp.eq.s32.totalorder %s160_s29, 0  ;;  %p174_p2 = scmp.eq.s32.totalorder %s1672_s25, 1 }
   0x8   : > { %p179_p3 = scmp.ne.s32.totalorder %s1598_s22, %s1594_s21  ;;  %p180_p4 = scmp.eq.s32.totalorder %s1205_s26, 1 }
   0x9   : > { %s1687_s30 = scalar_select %p161_p1, %s1602_s23, %s163_s28  }
   0xa   : > { %p1689_p5 = por %p174_p2, %p173_p0  ;;  %p1693_p6 = por %p180_p4, %p179_p3 }
   0xb   : > { %p1206_p7 = scmp.ge.s32.totalorder %s1606_s24, 1  ;;  %p187_p8 = scmp.lt.s32.totalorder %s1606_s24, 3 }
   0xc   : > { %s1964_s7 = scalar_select %p1689_p5, 1, 0 }
   0xd   : > { %s1965_s8 = scalar_select %p1693_p6, 1, 0 }
   0xe   : > { %p1961_p9 = scmp.eq.s32.totalorder %s1672_s25, 0  ;;  %p1700_p10 = pnand %p1206_p7, %p187_p8 }
   0xf   : > { %s1608_s10 = smov [#allocation2]   ;;  %s1512_s15 = scalar_lea.hbm %s1957_s3, 512 }
  0x10   : > { %s1966_s9 = scalar_select %p1700_p10, 1, 0 }
  0x11   : > { %s202_s11 = sshll.u32 %s1608_s10, 4  ;;  %p1396_p11 = pneg %p1700_p10  ;;  %s203_s11 = int_to_ptr.vmem [resolvable:$true] %s202_s11 }
  0x12   : > { %p1513_p13 = scmp.ne.s32.totalorder %s1957_s3, %s1512_s15  ;;  %p1519_p3 = scmp.lt.u32.totalorder %s1512_s15, %s1957_s3 }
  0x13   : > { %p1708_p12 = pnand %p1961_p9, %p1396_p11 }
  0x15   : > { %p1514_p0 = pneg %p1708_p12 }
  0x17   : > { %p1515_p1 = pnand %p1514_p0, %p1513_p13 }
  0x19   : > { %p1516_p2 = pneg %p1515_p1 }
  0x1b   : > { %p1521_p4 = pnand %p1519_p3, %p1516_p2 }
  0x1d   : > { %1524 = shalt.err (!%p1521_p4)
}
  0x1e   : > { %s1525_s20 = scalar_lea.vmem %s203_s11, 512  ;;  %p1533_p9 = scmp.lt.s32.totalorder %s203_s11, %s203_s11 }
  0x1f   : > { %p1526_p7 = scmp.ne.s32.totalorder %s203_s11, %s1525_s20  ;;  %p1534_p6 = scmp.lt.s32.totalorder %s1525_s20, %s1525_s20 }
  0x21   : > { %p1528_p8 = pnand %p1526_p7, %p1514_p0  ;;  %p1535_p5 = por %p1534_p6, %p1533_p9 }
  0x23   : > { %p1529_p11 = pneg %p1528_p8 }
  0x25   : > { %p1536_p10 = pnand %p1535_p5, %p1529_p11 }
  0x27   : > { %1539 = shalt.err (!%p1536_p10)
}
  0x28   : > { %s1609_s26 = smov 64   ;;  %s1610_s28 = smov 4  }
  0x29   : > { %1399 = dma.hbm_to_vmem [thread:$0]  (!%p1708_p12), %s1957_s3, 512, %s203_s11, [#allocation3], %s1609_s26, %s1609_s26, %s1610_s28  }
  0x2a   : > { %p1968_p13 = scmp.ne.s32.totalorder %s1966_s9, 0 }
  0x2b   : > { %p1969_p1 = scmp.eq.s32.totalorder (!%p1968_p13), %s1672_s25, 0 }
  0x2c   : > { %239 = sbr.rel (%p1968_p13) target bundleno = 1728 (0x6c0), region = 44 }
  0x33   : > { %1585 = dma.done.wait (%p1969_p1), [#allocation3], 512   ;;  %p1970_p0 = pmov %p1969_p1 }
  0x34   : > { %p273_p5 = scmp.lt.s32.totalorder %s1672_s25, 1  ;;  %vm346_vm0 = vcmask 1041408   ;;  %vm333_vm1 = vcmask 31744   ;;  %v1450_v2 = vld [vmem:[%s1956_s2] sm:$0xff]   ;;  %v1451_v4 = vld [vmem:[%s1956_s2 + $0x8] sm:$0xff]   ;;  %v1452_v5 = vld [vmem:[%s1956_s2 + $0x10] sm:$0xff]  }
  0x35   : > { %1587 = vsyncadd (%p1970_p0), [#allocation3], 4294966784  ;;  %1309 = vmatprep.mubr.msk.bf16.mxu0 %vm333_vm1, %v1450_v2  ;;  %v1453_v6 = vld [vmem:[%s1956_s2 + $0x18] sm:$0xff]   ;;  %v1454_v7 = vld [vmem:[#allocation2] sm:$0xff]   ;;  %vm487_vm2 = vcmask 523264   ;;  %v1611_v10 = vmov 0  }
  0x36   : > { %s1736_s13 = scalar_select %p273_p5, %s1672_s25, 1  ;;  %1325 = vmatprep.mubr.msk.bf16.mxu1 %vm487_vm2, %v1454_v7  ;;  %v303_v8 = vld [vmem:[%s1959_s5] sm:$0xff]  ;;  %v305_v9 = vld [vmem:[%s1959_s5 + $0x10] sm:$0xff]  ;;  %1446 = vset.pattern.permute.xlu0 %v1611_v10  ;;  %v304_v11 = vld [vmem:[%s1959_s5 + $0x8] sm:$0xff]  ;;  %v1612_v41 = vmov 1   ;;  %vm703_vm3 = vcmask 261120  }
  0x37   : > { %1447 = vset.pattern.permute.xlu1 %v1611_v10  ;;  %429 = vperm.xlu0 %1446, %v303_v8   ;;  %v306_v12 = vld [vmem:[%s1959_s5 + $0x18] sm:$0xff]  ;;  %v307_v13 = vld [vmem:[%s1959_s5 + $0x20] sm:$0xff]  ;;  %v308_v14 = vld [vmem:[%s1959_s5 + $0x28] sm:$0xff]  ;;  %s270_s18 = sand.u32 1, %s1598_s22   ;;  %s1265_s26 = sshll.u32 %s1672_s25, 10 }
  0x38   : > { %s1214_s12 = sshll.u32 %s1736_s13, 2  ;;  %439 = vperm.xlu1 %1447, %v305_v9   ;;  %v309_v15 = vld [vmem:[%s1959_s5 + $0x30] sm:$0xff]  ;;  %v310_v16 = vld [vmem:[%s1959_s5 + $0x38] sm:$0xff]  ;;  %v1455_v37 = vld [vmem:[#allocation2 + $0x8] sm:$0xff]   ;;  %s1264_s15 = sshll.u32 %s1736_s13, 6 }
  0x39   : > { %s281_s11 = scalar_lea.vmem %s1955_s1, %s1214_s12  ;;  %v1456_v38 = vld [vmem:[#allocation2 + $0x10] sm:$0xff]   ;;  %v1457_v39 = vld [vmem:[#allocation2 + $0x18] sm:$0xff]   ;;  %v1458_v40 = vld [vmem:[%s1958_s4] sm:$0xff]   ;;  %s1790_s16 = scalar_lea.vmem %s1954_s0, %s1264_s15 }
  0x3a   : > { %v311_v0 = vld [vmem:[%s281_s11] sm:$0xf]  ;;  %v1793_v50 = vld [vmem:[%s1790_s16 + $0x10] sm:$0xff]  ;;  %v1796_v53 = vld [vmem:[%s1790_s16 + $0x18] sm:$0xff]  ;;  %s1211_s19 = sshll.u32 %s270_s18, 6  ;;  %s1906_s12 = scalar_lea.hbm %s1960_s6, %s1265_s26 }
  0x3b   : > { %v312_v1 = vpack.c.bf16 %v311_v0, %v311_v0  ;;  %434 = vperm.xlu0 %1446, %v304_v11   ;;  %v1799_v54 = vld [vmem:[%s1790_s16] sm:$0xff]  ;;  %v1802_v57 = vld [vmem:[%s1790_s16 + $0x8] sm:$0xff]  ;;  %v1811_v7 = vld [vmem:[%s1790_s16 + $0x30] sm:$0xff]  ;;  %s1886_s20 = scalar_lea.vmem [#allocation5], %s1211_s19  ;;  %s1913_s25 = scalar_lea.sflag [#allocation4], %s270_s18 }
  0x3c   : > { %444 = vperm.xlu1 %1447, %v306_v12   ;;  %v1814_v10 = vld [vmem:[%s1790_s16 + $0x38] sm:$0xff]  ;;  %s1119_s28 = sshll.u32 %s1886_s20, 4  ;;  %p1971_p9 = scmp.ne.s32.totalorder %s1964_s7, 0  ;;  %s1908_s28 = int_to_ptr.vmem [resolvable:$true] %s1119_s28 }
  0x3d   : > { %1389 = vmatprep.subr.msk.bf16.mxu0 %vm346_vm0, %v312_v1  ;;  %v348_v3 = vsel %vm346_vm0, %v312_v1, 0  ;;  %s1540_s14 = scalar_lea.vmem %s1908_s28, 1024  ;;  %s1613_s15 = smov [#allocation5]  }
  0x3e   : > { %1308 = vmatpush3.bf16.msra.mxu0 %v348_v3  ;;  %p1541_p6 = scmp.ne.s32.totalorder %s1908_s28, %s1540_s14  ;;  %s1544_s11 = sshll.u32 %s1613_s15, 4  ;;  %s1545_s11 = int_to_ptr.vmem [resolvable:$false] %s1544_s11 }
  0x3f   : > { %449 = vperm.xlu0 %1446, %v307_v13   ;;  %s1546_s9 = scalar_lea.vmem %s1545_s11, 2048  ;;  %p1547_p2 = scmp.lt.s32.totalorder %s1908_s28, %s1545_s11 }
  0x40   : > { %454 = vperm.xlu1 %1447, %v308_v14   ;;  %v1820_v14 = vld [vmem:[%s1790_s16 + $0x28] sm:$0xff]  ;;  %p1542_p10 = pnand %p1541_p6, %p1971_p9  ;;  %p1548_p3 = scmp.lt.s32.totalorder %s1546_s9, %s1540_s14 }
  0x41   : > { %1310 = vmatmul.mubr.msk.bf16.vlgmr.msra.gmra.mrb[0].mxu0 %vm333_vm1, %v1451_v4 }
  0x42   : > { %1313 = vmatprep.mubr.msk.bf16.mxu0 %vm333_vm1, %v1452_v5  ;;  %p1543_p12 = pneg %p1542_p10  ;;  %p1549_p4 = por %p1548_p3, %p1547_p2 }
  0x43   : > { %459 = vperm.xlu0 %1446, %v309_v15  }
  0x44   : > { %464 = vperm.xlu1 %1447, %v310_v16   ;;  %p1550_p7 = pnand %p1549_p4, %p1543_p12 }
  0x47   : > { %1448 = vset.pattern.permute.xlu0 %v1612_v41 }
  0x48   : > { %1449 = vset.pattern.permute.xlu1 %v1612_v41  ;;  %586 = vperm.xlu0 %1448, %v303_v8  }
  0x49   : > { %1314 = vmatmul.mubr.msk.bf16.gmra.mrb[4].mxu0 %vm333_vm1, %v1453_v6  ;;  %590 = vperm.xlu1 %1449, %v304_v11   ;;  %v1817_v11 = vld [vmem:[%s1790_s16 + $0x20] sm:$0xff] }
  0x4a   : > { %1341 = vmatprep.mubr.msk.bf16.mxu0 %vm487_vm2, %v1458_v40 }
  0x4c   : > { %598 = vperm.xlu0 %1448, %v306_v12  }
  0x4d   : > { %594 = vperm.xlu1 %1449, %v305_v9  }
  0xb6   : > { %v430_v42 = vpop.permute.xlu0 %429 }
  0xb7   : > { %v440_v43 = vpop.permute.xlu1 %439 }
  0xba   : > { %v435_v44 = vpop.permute.xlu0 %434 }
  0xbb   : > { %v445_v45 = vpop.permute.xlu1 %444 }
  0xbe   : > { %v450_v49 = vpop.permute.xlu0 %449 }
  0xbf   : > { %v455_v58 = vpop.permute.xlu1 %454 }
  0xc2   : > { %v460_v1 = vpop.permute.xlu0 %459 }
  0xc3   : > { %v465_v6 = vpop.permute.xlu1 %464 }
 0x114   : > { %v1311_v17 = vpop.f32.mrb[0].mxu0 }
 0x115   : > { %v384_v18 = vpop.f32.mrb[1].mxu0  ;;  %v417_v20 = vmax.f32 %v1311_v17, 0.0 }
 0x116   : > { %v1312_v19 = vpop.f32.mrb[2].mxu0  ;;  %v415_v23 = vmax.f32 %v384_v18, 0.0 }
 0x117   : > { %v418_v21 = vmax.f32 %v1312_v19, 0.0  ;;  %v387_v22 = vpop.f32.mrb[3].mxu0 }
 0x118   : > { %v416_v24 = vmax.f32 %v387_v22, 0.0  ;;  %v1459_v22 = vld [vmem:[%s1958_s4 + $0x8] sm:$0xff]  }
 0x119   : > { %v424_v25 = vpack.c.bf16 %v418_v21, %v417_v20 }
 0x11a   : > { %v423_v26 = vpack.c.bf16 %v416_v24, %v415_v23  ;;  %v591_v23 = vpop.permute.xlu1 %590  ;;  %v587_v24 = vpop.permute.xlu0 %586 }
 0x11c   : > { %v1315_v27 = vpop.f32.mrb[4].mxu0  ;;  %1317 = vmatprep.subr.bf16.mxu1 %v423_v26 }
 0x11d   : > { %v400_v28 = vpop.f32.mrb[5].mxu0  ;;  %1318 = vmatpush3.bf16.msra.mxu1 %v423_v26  ;;  %v421_v30 = vmax.f32 %v1315_v27, 0.0 }
 0x11e   : > { %v1316_v29 = vpop.f32.mrb[6].mxu0  ;;  %1319 = vmatprep.subr.bf16.mxu1 %v424_v25  ;;  %v419_v33 = vmax.f32 %v400_v28, 0.0  ;;  %v595_v26 = vpop.permute.xlu1 %594 }
 0x11f   : > { %v422_v31 = vmax.f32 %v1316_v29, 0.0  ;;  %v403_v32 = vpop.f32.mrb[7].mxu0 }
 0x120   : > { %v420_v34 = vmax.f32 %v403_v32, 0.0 }
 0x121   : > { %v426_v35 = vpack.c.bf16 %v422_v31, %v421_v30  ;;  %1320 = vmatpush3.bf16.msra.mxu1 %v424_v25  ;;  %v599_v30 = vpop.permute.xlu0 %598 }
 0x122   : > { %v425_v36 = vpack.c.bf16 %v420_v34, %v419_v33 }
 0x124   : > { %1321 = vmatprep.subr.bf16.mxu1 %v425_v36 }
 0x125   : > { %1322 = vmatpush3.bf16.msra.mxu1 %v425_v36 }
 0x126   : > { %1323 = vmatprep.subr.bf16.mxu1 %v426_v35 }
 0x129   : > { %1324 = vmatpush3.bf16.msra.mxu1 %v426_v35 }
 0x12c   : > { %1326 = vmatmul.mubr.msk.bf16.vlgmr.msra.gmra.mrb[0].mxu1 %vm487_vm2, %v1455_v37 }
 0x12d   : > { %1329 = vmatprep.mubr.msk.bf16.mxu1 %vm487_vm2, %v1456_v38 }
 0x134   : > { %1330 = vmatmul.mubr.msk.bf16.gmra.mrb[4].mxu1 %vm487_vm2, %v1457_v39 }
 0x1ff   : > { %v1327_v46 = vpop.f32.mrb[0].mxu1 }
 0x200   : > { %v543_v47 = vadd.f32 %v1327_v46, %v440_v43  ;;  %v534_v48 = vpop.f32.mrb[1].mxu1 }
 0x201   : > { %v535_v51 = vadd.f32 %v534_v48, %v430_v42  ;;  %v1328_v52 = vpop.f32.mrb[2].mxu1 }
 0x202   : > { %v546_v55 = vadd.f32 %v1328_v52, %v445_v45  ;;  %v537_v56 = vpop.f32.mrb[3].mxu1  ;;  %v575_v60 = vadd.f32 %v1793_v50, %v543_v47 }
 0x203   : > { %v538_v59 = vadd.f32 %v537_v56, %v435_v44  ;;  %v573_v62 = vadd.f32 %v1799_v54, %v535_v51 }
 0x204   : > { %v576_v61 = vadd.f32 %v1796_v53, %v546_v55 }
 0x205   : > { %v574_v63 = vadd.f32 %v1802_v57, %v538_v59 }
 0x206   : > { %v1808_v0 = vpack.c.bf16 %v576_v61, %v575_v60 }
 0x207   : > { %v1331_v2 = vpop.f32.mrb[4].mxu1  ;;  %v581_v3 = vpack.c.bf16 %v574_v63, %v573_v62 }
 0x208   : > { %v559_v4 = vadd.f32 %v1331_v2, %v460_v1  ;;  %v550_v5 = vpop.f32.mrb[5].mxu1 }
 0x209   : > { %v551_v8 = vadd.f32 %v550_v5, %v450_v49  ;;  %v1332_v9 = vpop.f32.mrb[6].mxu1  ;;  %1333 = vmatprep.subr.bf16.mxu0 %v581_v3  ;;  %1381 = vmatprep.mubr.bf16.mxu1 %v581_v3 }
 0x20a   : > { %v562_v12 = vadd.f32 %v1332_v9, %v465_v6  ;;  %v553_v13 = vpop.f32.mrb[7].mxu1  ;;  %1334 = vmatpush3.bf16.msra.mxu0 %v581_v3  ;;  %v579_v16 = vadd.f32 %v1811_v7, %v559_v4 }
 0x20b   : > { %v554_v15 = vadd.f32 %v553_v13, %v455_v58  ;;  %1335 = vmatprep.subr.bf16.mxu0 %v1808_v0  ;;  %v577_v18 = vadd.f32 %v1817_v11, %v551_v8 }
 0x20c   : > { %v580_v17 = vadd.f32 %v1814_v10, %v562_v12 }
 0x20d   : > { %v578_v19 = vadd.f32 %v1820_v14, %v554_v15 }
 0x20e   : > { %1336 = vmatpush3.bf16.msra.mxu0 %v1808_v0  ;;  %v1828_v20 = vpack.c.bf16 %v580_v17, %v579_v16 }
 0x20f   : > { %v1830_v21 = vpack.c.bf16 %v578_v19, %v577_v18 }
 0x211   : > { %1337 = vmatprep.subr.bf16.mxu0 %v1830_v21 }
 0x212   : > { %1338 = vmatpush3.bf16.msra.mxu0 %v1830_v21 }
 0x213   : > { %1339 = vmatprep.subr.bf16.mxu0 %v1828_v20 }
 0x216   : > { %1340 = vmatpush3.bf16.msra.mxu0 %v1828_v20 }
 0x219   : > { %1342 = vmatmul.mubr.msk.bf16.vlgmr.msra.gmra.mrb[8].mxu0 %vm487_vm2, %v1459_v22 }
 0x2ec   : > { %v1343_v25 = vpop.f32.mrb[8].mxu0 }
 0x2ed   : > { %v651_v27 = vpop.f32.mrb[9].mxu0  ;;  %v660_v32 = vadd.f32 %v1343_v25, %v595_v26 }
 0x2ee   : > { %v652_v28 = vadd.f32 %v651_v27, %v587_v24  ;;  %v1344_v29 = vpop.f32.mrb[10].mxu0 }
 0x2ef   : > { %v654_v31 = vpop.f32.mrb[11].mxu0  ;;  %v663_v35 = vadd.f32 %v1344_v29, %v599_v30  ;;  %v668_v37 = vmul.f32 %v660_v32, %v660_v32 }
 0x2f0   : > { %v655_v33 = vadd.f32 %v654_v31, %v591_v23  ;;  %v666_v34 = vmul.f32 %v652_v28, %v652_v28 }
 0x2f1   : > { %v669_v39 = vmul.f32 %v663_v35, %v663_v35 }
 0x2f2   : > { %v667_v36 = vmul.f32 %v655_v33, %v655_v33 }
 0x2f4   : > { %v670_v38 = vadd.f32 %v667_v36, %v666_v34 }
 0x2f6   : > { %v671_v40 = vadd.f32 %v670_v38, %v668_v37 }
 0x2f8   : > { %v672_v41 = vadd.f32 %v671_v40, %v669_v39 }
 0x2fa   : > { %v673_v42 = vrot.slane %v672_v41, 4 }
 0x2fc   : > { %v674_v43 = vadd.f32 %v673_v42, %v672_v41 }
 0x2fe   : > { %v675_v44 = vrot.slane %v674_v43, 2 }
 0x300   : > { %v676_v45 = vadd.f32 %v675_v44, %v674_v43 }
 0x302   : > { %v677_v46 = vrot.slane %v676_v45, 1 }
 0x304   : > { %v678_v47 = vadd.f32 %v677_v46, %v676_v45 }
 0x306   : > { %v679_v48 = vmax.f32 %v678_v47, 1e-24 }
 0x308   : > { %1460 = vrsqrt.f32 %v679_v48 }
 0x312   : > { %v1461_v49 = vpop.eup %1460 }
 0x313   : > { %v682_v51 = vmul.f32 %v1461_v49, %v655_v33  ;;  %v681_v52 = vmul.f32 %v1461_v49, %v652_v28  ;;  %v683_v55 = vmul.f32 %v1461_v49, %v660_v32  ;;  %v684_v56 = vmul.f32 %v1461_v49, %v663_v35 }
 0x315   : > { %v685_v58 = vpack.c.bf16 %v682_v51, %v681_v52  ;;  %v686_v59 = vpack.c.bf16 %v684_v56, %v683_v55 }
 0x317   : > { %687 = vxpose.xlu1.c.b16.start [1/2] (short) %v685_v58, 128  ;;  %1345 = vmatprep.subr.bf16.mxu0 %v685_v58 }
 0x318   : > { %1346 = vmatpush3.bf16.msra.mxu0 %v685_v58 }
 0x319   : > { %1347 = vmatprep.subr.bf16.mxu0 %v686_v59 }
 0x31b   : > { %688 = vxpose.xlu1.c.b16.end [2/2] (short) %v686_v59, 128 }
 0x31c   : > { %1348 = vmatpush3.bf16.msra.mxu0 %v686_v59 }
 0x37d   : > { %v695_v60 = vpop.trf.xlu1 }
 0x37e   : > { %1349 = vmatprep.mubr.msk.bf16.mxu0 %vm703_vm3, %v695_v60 }
 0x381   : > { %v696_v61 = vpop.trf.xlu1 }
 0x382   : > { %1350 = vmatmul.mubr.msk.bf16.vlgmr.msra.gmra.mrb[12].mxu0 %vm703_vm3, %v696_v61 }
 0x385   : > { %v697_v62 = vpop.trf.xlu1 }
 0x386   : > { %1353 = vmatprep.mubr.msk.bf16.mxu0 %vm703_vm3, %v697_v62 }
 0x389   : > { %v698_v63 = vpop.trf.xlu1 }
 0x38a   : > { %1354 = vmatmul.mubr.msk.bf16.gmra.mrb[16].mxu0 %vm703_vm3, %v698_v63 }
 0x38d   : > { %v699_v1 = vpop.trf.xlu1 }
 0x38e   : > { %1357 = vmatprep.mubr.msk.bf16.mxu0 %vm703_vm3, %v699_v1 }
 0x391   : > { %v700_v2 = vpop.trf.xlu1 }
 0x392   : > { %1358 = vmatmul.mubr.msk.bf16.gmra.mrb[20].mxu0 %vm703_vm3, %v700_v2 }
 0x395   : > { %v701_v3 = vpop.trf.xlu1 }
 0x396   : > { %1361 = vmatprep.mubr.msk.bf16.mxu0 %vm703_vm3, %v701_v3 }
 0x399   : > { %v702_v4 = vpop.trf.xlu1 }
 0x39a   : > { %1362 = vmatmul.mubr.msk.bf16.gmra.mrb[24].mxu0 %vm703_vm3, %v702_v4 }
 0x455   : > { %v1351_v5 = vpop.f32.mrb[12].mxu0 }
 0x456   : > { %v1245_v6 = vadd.f32 -1.0, %v1351_v5  ;;  %v762_v8 = vpop.f32.mrb[13].mxu0 }
 0x457   : > { %v1243_v9 = vadd.f32 -1.0, %v762_v8  ;;  %v1352_v12 = vpop.f32.mrb[14].mxu0 }
 0x458   : > { %v843_v13 = vmul.f32 30.0, %v1245_v6  ;;  %v1246_v15 = vadd.f32 -1.0, %v1352_v12  ;;  %v765_v16 = vpop.f32.mrb[15].mxu0 }
 0x459   : > { %v841_v17 = vmul.f32 30.0, %v1243_v9  ;;  %v1244_v18 = vadd.f32 -1.0, %v765_v16 }
 0x45a   : > { %v861_v19 = vmul.f32 1.442695, %v843_v13  ;;  %v844_v22 = vmul.f32 30.0, %v1246_v15 }
 0x45b   : > { %v857_v23 = vmul.f32 1.442695, %v841_v17  ;;  %v842_v24 = vmul.f32 30.0, %v1244_v18 }
 0x45c   : > { %1462 = vpow2.f32 %v861_v19  ;;  %v863_v25 = vmul.f32 1.442695, %v844_v22 }
 0x45d   : > { %1464 = vpow2.f32 %v857_v23  ;;  %v859_v26 = vmul.f32 1.442695, %v842_v24  ;;  %v1355_v27 = vpop.f32.mrb[16].mxu0 }
 0x45e   : > { %1466 = vpow2.f32 %v863_v25  ;;  %v1249_v28 = vadd.f32 -1.0, %v1355_v27  ;;  %v778_v29 = vpop.f32.mrb[17].mxu0 }
 0x45f   : > { %1468 = vpow2.f32 %v859_v26  ;;  %v1247_v30 = vadd.f32 -1.0, %v778_v29  ;;  %v1356_v31 = vpop.f32.mrb[18].mxu0 }
 0x460   : > { %v847_v32 = vmul.f32 30.0, %v1249_v28  ;;  %v1250_v33 = vadd.f32 -1.0, %v1356_v31  ;;  %v781_v34 = vpop.f32.mrb[19].mxu0 }
 0x461   : > { %v845_v35 = vmul.f32 30.0, %v1247_v30  ;;  %v1248_v36 = vadd.f32 -1.0, %v781_v34 }
 0x462   : > { %v869_v37 = vmul.f32 1.442695, %v847_v32  ;;  %v848_v38 = vmul.f32 30.0, %v1250_v33 }
 0x463   : > { %v865_v39 = vmul.f32 1.442695, %v845_v35  ;;  %v846_v40 = vmul.f32 30.0, %v1248_v36 }
 0x464   : > { %1470 = vpow2.f32 %v869_v37  ;;  %v871_v41 = vmul.f32 1.442695, %v848_v38 }
 0x465   : > { %1472 = vpow2.f32 %v865_v39  ;;  %v867_v42 = vmul.f32 1.442695, %v846_v40  ;;  %v1359_v43 = vpop.f32.mrb[20].mxu0 }
 0x466   : > { %v1463_v44 = vpop.eup %1462  ;;  %1474 = vpow2.f32 %v871_v41  ;;  %v1253_v45 = vadd.f32 -1.0, %v1359_v43  ;;  %v794_v46 = vpop.f32.mrb[21].mxu0 }
 0x467   : > { %v1465_v47 = vpop.eup %1464  ;;  %1476 = vpow2.f32 %v867_v42  ;;  %v1251_v48 = vadd.f32 -1.0, %v794_v46  ;;  %v1360_v49 = vpop.f32.mrb[22].mxu0 }
 0x468   : > { %v1467_v51 = vpop.eup %1466  ;;  %v851_v52 = vmul.f32 30.0, %v1253_v45  ;;  %v1254_v55 = vadd.f32 -1.0, %v1360_v49  ;;  %v797_v56 = vpop.f32.mrb[23].mxu0 }
 0x469   : > { %v1469_v58 = vpop.eup %1468  ;;  %v849_v59 = vmul.f32 30.0, %v1251_v48  ;;  %v1252_v60 = vadd.f32 -1.0, %v797_v56  ;;  %v911_v61 = vpack.c.bf16 %v1467_v51, %v1463_v44 }
 0x46a   : > { %v889_v62 = vadd.f32 %v1469_v58, %v1465_v47  ;;  %v877_v63 = vmul.f32 1.442695, %v851_v52  ;;  %v852_v1 = vmul.f32 30.0, %v1254_v55  ;;  %v910_v2 = vpack.c.bf16 %v1469_v58, %v1465_v47 }
 0x46b   : > { %v873_v3 = vmul.f32 1.442695, %v849_v59  ;;  %v850_v4 = vmul.f32 30.0, %v1252_v60 }
 0x46c   : > { %v890_v5 = vadd.f32 %v1463_v44, %v889_v62  ;;  %1478 = vpow2.f32 %v877_v63  ;;  %v879_v6 = vmul.f32 1.442695, %v852_v1  ;;  %1365 = vmatprep.subr.bf16.mxu1 %v910_v2 }
 0x46d   : > { %1480 = vpow2.f32 %v873_v3  ;;  %v875_v8 = vmul.f32 1.442695, %v850_v4  ;;  %v1363_v9 = vpop.f32.mrb[24].mxu0  ;;  %1366 = vmatpush3.bf16.msra.mxu1 %v910_v2 }
 0x46e   : > { %v1471_v12 = vpop.eup %1470  ;;  %v891_v13 = vadd.f32 %v1467_v51, %v890_v5  ;;  %1482 = vpow2.f32 %v879_v6  ;;  %v1257_v15 = vadd.f32 -1.0, %v1363_v9  ;;  %v810_v16 = vpop.f32.mrb[25].mxu0  ;;  %1367 = vmatprep.subr.bf16.mxu1 %v911_v61 }
 0x46f   : > { %v1473_v17 = vpop.eup %1472  ;;  %1484 = vpow2.f32 %v875_v8  ;;  %v1255_v18 = vadd.f32 -1.0, %v810_v16  ;;  %v1364_v19 = vpop.f32.mrb[26].mxu0 }
 0x470   : > { %v1475_v22 = vpop.eup %1474  ;;  %v892_v23 = vadd.f32 %v1473_v17, %v891_v13  ;;  %v855_v24 = vmul.f32 30.0, %v1257_v15  ;;  %v1258_v25 = vadd.f32 -1.0, %v1364_v19  ;;  %v813_v26 = vpop.f32.mrb[27].mxu0 }
 0x471   : > { %v1477_v27 = vpop.eup %1476  ;;  %v853_v28 = vmul.f32 30.0, %v1255_v18  ;;  %v1256_v29 = vadd.f32 -1.0, %v813_v26  ;;  %1368 = vmatpush3.bf16.msra.mxu1 %v911_v61  ;;  %v913_v30 = vpack.c.bf16 %v1475_v22, %v1471_v12 }
 0x472   : > { %v893_v31 = vadd.f32 %v1477_v27, %v892_v23  ;;  %v885_v32 = vmul.f32 1.442695, %v855_v24  ;;  %v856_v33 = vmul.f32 30.0, %v1258_v25  ;;  %v912_v34 = vpack.c.bf16 %v1477_v27, %v1473_v17 }
 0x473   : > { %v881_v35 = vmul.f32 1.442695, %v853_v28  ;;  %v854_v36 = vmul.f32 30.0, %v1256_v29 }
 0x474   : > { %v894_v37 = vadd.f32 %v1471_v12, %v893_v31  ;;  %1486 = vpow2.f32 %v885_v32  ;;  %v887_v38 = vmul.f32 1.442695, %v856_v33  ;;  %1369 = vmatprep.subr.bf16.mxu1 %v912_v34 }
 0x475   : > { %1488 = vpow2.f32 %v881_v35  ;;  %v883_v39 = vmul.f32 1.442695, %v854_v36  ;;  %1370 = vmatpush3.bf16.msra.mxu1 %v912_v34 }
 0x476   : > { %v1479_v40 = vpop.eup %1478  ;;  %v895_v41 = vadd.f32 %v1475_v22, %v894_v37  ;;  %1490 = vpow2.f32 %v887_v38  ;;  %1371 = vmatprep.subr.bf16.mxu1 %v913_v30 }
 0x477   : > { %v1481_v42 = vpop.eup %1480  ;;  %1492 = vpow2.f32 %v883_v39 }
 0x478   : > { %v1483_v43 = vpop.eup %1482  ;;  %v896_v44 = vadd.f32 %v1481_v42, %v895_v41 }
 0x479   : > { %v1485_v45 = vpop.eup %1484  ;;  %1372 = vmatpush3.bf16.msra.mxu1 %v913_v30  ;;  %v915_v46 = vpack.c.bf16 %v1483_v43, %v1479_v40 }
 0x47a   : > { %v897_v47 = vadd.f32 %v1485_v45, %v896_v44  ;;  %v914_v48 = vpack.c.bf16 %v1485_v45, %v1481_v42 }
 0x47c   : > { %v898_v49 = vadd.f32 %v1479_v40, %v897_v47  ;;  %1373 = vmatprep.subr.bf16.mxu1 %v914_v48 }
 0x47d   : > { %1374 = vmatpush3.bf16.msra.mxu1 %v914_v48 }
 0x47e   : > { %v1487_v51 = vpop.eup %1486  ;;  %v899_v52 = vadd.f32 %v1483_v43, %v898_v49  ;;  %1375 = vmatprep.subr.bf16.mxu1 %v915_v46 }
 0x47f   : > { %v1489_v55 = vpop.eup %1488 }
 0x480   : > { %v1491_v56 = vpop.eup %1490  ;;  %v900_v58 = vadd.f32 %v1489_v55, %v899_v52 }
 0x481   : > { %v1493_v59 = vpop.eup %1492  ;;  %1376 = vmatpush3.bf16.msra.mxu1 %v915_v46  ;;  %v917_v60 = vpack.c.bf16 %v1491_v56, %v1487_v51 }
 0x482   : > { %v901_v61 = vadd.f32 %v1493_v59, %v900_v58  ;;  %v916_v62 = vpack.c.bf16 %v1493_v59, %v1489_v55 }
 0x484   : > { %v902_v63 = vadd.f32 %v1487_v51, %v901_v61  ;;  %1377 = vmatprep.subr.bf16.mxu1 %v916_v62 }
 0x485   : > { %1378 = vmatpush3.bf16.msra.mxu1 %v916_v62 }
 0x486   : > { %v903_v1 = vadd.f32 %v1491_v56, %v902_v63  ;;  %1379 = vmatprep.subr.bf16.mxu1 %v917_v60 }
 0x488   : > { %v904_v2 = vrot.slane %v903_v1, 4 }
 0x489   : > { %1380 = vmatpush3.bf16.msra.mxu1 %v917_v60 }
 0x48a   : > { %v905_v3 = vadd.f32 %v904_v2, %v903_v1 }
 0x48c   : > { %1382 = vmatmul.mubr.bf16.vlgmr.msra.gmra.mrb[8].mxu1 %v1808_v0  ;;  %v906_v4 = vrot.slane %v905_v3, 2 }
 0x48d   : > { %1385 = vmatprep.mubr.bf16.mxu1 %v1830_v21 }
 0x48e   : > { %v907_v5 = vadd.f32 %v906_v4, %v905_v3 }
 0x490   : > { %v908_v6 = vrot.slane %v907_v5, 1 }
 0x492   : > { %v909_v8 = vadd.f32 %v908_v6, %v907_v5 }
 0x494   : > { %1386 = vmatmul.mubr.bf16.gmra.mrb[12].mxu1 %v1828_v20  ;;  %1494 = vrcp.f32 %v909_v8 }
 0x49e   : > { %v1495_v9 = vpop.eup %1494 }
 0x55f   : > { %v1383_v12 = vpop.f32.mrb[8].mxu1 }
 0x560   : > { %v986_v13 = vmul.f32 %v1495_v9, %v1383_v12  ;;  %v952_v15 = vpop.f32.mrb[9].mxu1 }
 0x561   : > { %v984_v16 = vmul.f32 %v1495_v9, %v952_v15  ;;  %v1384_v17 = vpop.f32.mrb[10].mxu1 }
 0x562   : > { %v987_v18 = vmul.f32 %v1495_v9, %v1384_v17  ;;  %v955_v19 = vpop.f32.mrb[11].mxu1  ;;  %v994_v0 = vadd.f32 %v986_v13, %v1793_v50 }
 0x563   : > { %v985_v21 = vmul.f32 %v1495_v9, %v955_v19  ;;  %v992_v22 = vadd.f32 %v984_v16, %v1799_v54 }
 0x564   : > { %1004 = vadd.xlane.f32.xlu0 %v994_v0  ;;  %v995_v20 = vadd.f32 %v987_v18, %v1796_v53 }
 0x565   : > { %v993_v30 = vadd.f32 %v985_v21, %v1802_v57 }
 0x566   : > { %1006 = vadd.xlane.f32.xlu1 %v995_v20 }
 0x567   : > { %v1387_v23 = vpop.f32.mrb[12].mxu1 }
 0x568   : > { %v990_v24 = vmul.f32 %v1495_v9, %v1387_v23  ;;  %v968_v25 = vpop.f32.mrb[13].mxu1  ;;  %1000 = vadd.xlane.f32.xlu0 %v992_v22 }
 0x569   : > { %v988_v26 = vmul.f32 %v1495_v9, %v968_v25  ;;  %v1388_v27 = vpop.f32.mrb[14].mxu1 }
 0x56a   : > { %v991_v28 = vmul.f32 %v1495_v9, %v1388_v27  ;;  %v971_v29 = vpop.f32.mrb[15].mxu1  ;;  %v998_v50 = vadd.f32 %v990_v24, %v1811_v7 }
 0x56b   : > { %v989_v31 = vmul.f32 %v1495_v9, %v971_v29  ;;  %v996_v53 = vadd.f32 %v988_v26, %v1817_v11 }
 0x56c   : > { %1002 = vadd.xlane.f32.xlu0 %v993_v30  ;;  %v999_v32 = vadd.f32 %v991_v28, %v1814_v10 }
 0x56d   : > { %v997_v54 = vadd.f32 %v989_v31, %v1820_v14 }
 0x570   : > { %1012 = vadd.xlane.f32.xlu0 %v998_v50 }
 0x574   : > { %1008 = vadd.xlane.f32.xlu0 %v996_v53 }
 0x578   : > { %1010 = vadd.xlane.f32.xlu0 %v997_v54 }
 0x57c   : > { %1014 = vadd.xlane.f32.xlu0 %v999_v32 }
 0x5f1   : > { %v1005_v33 = vpop.xlane.xlu0 %1004 }
 0x5f2   : > { %v1019_v34 = vmul.f32 0.0078125, %v1005_v33 }
 0x5f3   : > { %v1007_v35 = vpop.xlane.xlu1 %1006 }
 0x5f4   : > { %v1027_v36 = vsub.f32 %v994_v0, %v1019_v34  ;;  %v1020_v57 = vmul.f32 0.0078125, %v1007_v35 }
 0x5f5   : > { %v1001_v37 = vpop.xlane.xlu0 %1000 }
 0x5f6   : > { %v1017_v38 = vmul.f32 0.0078125, %v1001_v37  ;;  %v1035_v39 = vmul.f32 %v1027_v36, %v1027_v36  ;;  %v1859_v41 = vsub.f32 %v995_v20, %v1020_v57 }
 0x5f8   : > { %v1025_v40 = vsub.f32 %v992_v22, %v1017_v38  ;;  %1045 = vadd.xlane.f32.xlu0 %v1035_v39  ;;  %v1036_v10 = vmul.f32 %v1859_v41, %v1859_v41 }
 0x5f9   : > { %v1003_v7 = vpop.xlane.xlu0 %1002 }
 0x5fa   : > { %v1018_v11 = vmul.f32 0.0078125, %v1003_v7  ;;  %v1033_v42 = vmul.f32 %v1025_v40, %v1025_v40 }
 0x5fc   : > { %1041 = vadd.xlane.f32.xlu0 %v1033_v42  ;;  %v1861_v43 = vsub.f32 %v993_v30, %v1018_v11 }
 0x5fd   : > { %v1013_v14 = vpop.xlane.xlu0 %1012 }
 0x5fe   : > { %v1023_v45 = vmul.f32 0.0078125, %v1013_v14  ;;  %v1034_v47 = vmul.f32 %v1861_v43, %v1861_v43 }
 0x600   : > { %1047 = vadd.xlane.f32.xlu0 %v1036_v10  ;;  %v1869_v51 = vsub.f32 %v998_v50, %v1023_v45 }
 0x601   : > { %v1009_v44 = vpop.xlane.xlu0 %1008 }
 0x602   : > { %v1021_v46 = vmul.f32 0.0078125, %v1009_v44  ;;  %v1039_v60 = vmul.f32 %v1869_v51, %v1869_v51 }
 0x604   : > { %v1867_v48 = vsub.f32 %v996_v53, %v1021_v46  ;;  %1043 = vadd.xlane.f32.xlu0 %v1034_v47 }
 0x605   : > { %v1011_v49 = vpop.xlane.xlu0 %1010 }
 0x606   : > { %v1022_v52 = vmul.f32 0.0078125, %v1011_v49  ;;  %v1037_v55 = vmul.f32 %v1867_v48, %v1867_v48 }
 0x608   : > { %v1873_v56 = vsub.f32 %v997_v54, %v1022_v52  ;;  %1049 = vadd.xlane.f32.xlu0 %v1037_v55 }
 0x609   : > { %v1015_v58 = vpop.xlane.xlu0 %1014 }
 0x60a   : > { %v1024_v59 = vmul.f32 0.0078125, %v1015_v58  ;;  %v1038_v61 = vmul.f32 %v1873_v56, %v1873_v56 }
 0x60c   : > { %v1879_v62 = vsub.f32 %v999_v32, %v1024_v59  ;;  %1053 = vadd.xlane.f32.xlu0 %v1039_v60  ;;  %1051 = vadd.xlane.f32.xlu1 %v1038_v61 }
 0x60e   : > { %v1040_v63 = vmul.f32 %v1879_v62, %v1879_v62 }
 0x610   : > { %1055 = vadd.xlane.f32.xlu1 %v1040_v63 }
 0x685   : > { %v1046_v1 = vpop.xlane.xlu0 %1045 }
 0x686   : > { %v1059_v2 = vmul.f32 0.0078125, %v1046_v1 }
 0x688   : > { %v1067_v3 = vadd.f32 1e-05, %v1059_v2 }
 0x689   : > { %v1042_v4 = vpop.xlane.xlu0 %1041 }
 0x68a   : > { %1496 = vrsqrt.f32 %v1067_v3  ;;  %v1057_v5 = vmul.f32 0.0078125, %v1042_v4 }
 0x68c   : > { %v1065_v6 = vadd.f32 1e-05, %v1057_v5 }
 0x68d   : > { %v1048_v8 = vpop.xlane.xlu0 %1047 }
 0x68e   : > { %1498 = vrsqrt.f32 %v1065_v6  ;;  %v1060_v9 = vmul.f32 0.0078125, %v1048_v8 }
 0x690   : > { %v1068_v12 = vadd.f32 1e-05, %v1060_v9 }
 0x691   : > { %v1044_v13 = vpop.xlane.xlu0 %1043 }
 0x692   : > { %1500 = vrsqrt.f32 %v1068_v12  ;;  %v1058_v15 = vmul.f32 0.0078125, %v1044_v13 }
 0x694   : > { %v1497_v16 = vpop.eup %1496  ;;  %v1066_v17 = vadd.f32 1e-05, %v1058_v15 }
 0x695   : > { %v1083_v18 = vmul.f32 %v1497_v16, %v1027_v36  ;;  %v1050_v19 = vpop.xlane.xlu0 %1049 }
 0x696   : > { %1502 = vrsqrt.f32 %v1066_v17  ;;  %v1061_v0 = vmul.f32 0.0078125, %v1050_v19 }
 0x697   : > { %v1091_v21 = vmax.f32 %v1083_v18, 0.0 }
 0x698   : > { %v1499_v20 = vpop.eup %1498  ;;  %v1069_v22 = vadd.f32 1e-05, %v1061_v0 }
 0x699   : > { %1099 = vst [vmem:[%s1886_s20 + $0x10] sm:$0xff] %v1091_v21  ;;  %v1081_v23 = vmul.f32 %v1499_v20, %v1025_v40  ;;  %v1052_v24 = vpop.xlane.xlu1 %1051  ;;  %v1054_v25 = vpop.xlane.xlu0 %1053 }
 0x69a   : > { %1504 = vrsqrt.f32 %v1069_v22  ;;  %v1062_v26 = vmul.f32 0.0078125, %v1052_v24  ;;  %v1063_v27 = vmul.f32 0.0078125, %v1054_v25 }
 0x69b   : > { %v1089_v28 = vmax.f32 %v1081_v23, 0.0 }
 0x69c   : > { %v1501_v29 = vpop.eup %1500  ;;  %v1070_v30 = vadd.f32 1e-05, %v1062_v26  ;;  %v1071_v31 = vadd.f32 1e-05, %v1063_v27 }
 0x69d   : > { %1097 = vst [vmem:[%s1886_s20] sm:$0xff] %v1089_v28  ;;  %v1084_v50 = vmul.f32 %v1501_v29, %v1859_v41  ;;  %v1056_v53 = vpop.xlane.xlu1 %1055 }
 0x69e   : > { %1506 = vrsqrt.f32 %v1070_v30  ;;  %v1064_v54 = vmul.f32 0.0078125, %v1056_v53 }
 0x69f   : > { %v1092_v32 = vmax.f32 %v1084_v50, 0.0  ;;  %1508 = vrsqrt.f32 %v1071_v31 }
 0x6a0   : > { %v1503_v33 = vpop.eup %1502  ;;  %v1072_v34 = vadd.f32 1e-05, %v1064_v54 }
 0x6a1   : > { %1100 = vst [vmem:[%s1886_s20 + $0x18] sm:$0xff] %v1092_v32  ;;  %v1082_v35 = vmul.f32 %v1503_v33, %v1861_v43 }
 0x6a2   : > { %1510 = vrsqrt.f32 %v1072_v34 }
 0x6a3   : > { %v1090_v36 = vmax.f32 %v1082_v35, 0.0 }
 0x6a4   : > { %v1505_v37 = vpop.eup %1504 }
 0x6a5   : > { %1098 = vst [vmem:[%s1886_s20 + $0x8] sm:$0xff] %v1090_v36  ;;  %v1085_v57 = vmul.f32 %v1505_v37, %v1867_v48 }
 0x6a7   : > { %v1093_v38 = vmax.f32 %v1085_v57, 0.0 }
 0x6a8   : > { %v1507_v39 = vpop.eup %1506 }
 0x6a9   : > { %v1509_v40 = vpop.eup %1508  ;;  %1101 = vst [vmem:[%s1886_s20 + $0x20] sm:$0xff] %v1093_v38  ;;  %v1086_v7 = vmul.f32 %v1507_v39, %v1873_v56 }
 0x6aa   : > { %v1087_v41 = vmul.f32 %v1509_v40, %v1869_v51 }
 0x6ab   : > { %v1094_v11 = vmax.f32 %v1086_v7, 0.0 }
 0x6ac   : > { %v1511_v42 = vpop.eup %1510  ;;  %v1095_v14 = vmax.f32 %v1087_v41, 0.0 }
 0x6ad   : > { %1102 = vst [vmem:[%s1886_s20 + $0x28] sm:$0xff] %v1094_v11  ;;  %v1088_v43 = vmul.f32 %v1511_v42, %v1879_v62 }
 0x6ae   : > { %1103 = vst [vmem:[%s1886_s20 + $0x30] sm:$0xff] %v1095_v14 }
 0x6af   : > { %v1096_v10 = vmax.f32 %v1088_v43, 0.0 }
 0x6b1   : > { %1104 = vst [vmem:[%s1886_s20 + $0x38] sm:$0xff] %v1096_v10 }
 0x6b2   : > { %1553 = shalt.err (!%p1550_p7)
}
 0x6b3   : > { %s1554_s16 = scalar_lea.hbm %s1906_s12, 1024  ;;  %s1558_s18 = scalar_lea.hbm %s1960_s6, 2048 }
 0x6b4   : > { %p1555_p8 = scmp.ne.s32.totalorder %s1906_s12, %s1554_s16  ;;  %p1559_p1 = scmp.lt.u32.totalorder %s1906_s12, %s1960_s6 }
 0x6b5   : > { %p1560_p0 = scmp.lt.u32.totalorder %s1558_s18, %s1554_s16  ;;  %p1562_p6 = scmp.lt.u32.totalorder %s1554_s16, %s1906_s12 }
 0x6b6   : > { %p1556_p11 = pnand %p1555_p8, %p1971_p9 }
 0x6b7   : > { %p1561_p5 = por %p1560_p0, %p1559_p1 }
 0x6b8   : > { %p1557_p13 = pneg %p1556_p11 }
 0x6b9   : > { %p1563_p10 = por %p1562_p6, %p1561_p5 }
 0x6bb   : > { %p1564_p12 = pnand %p1563_p10, %p1557_p13 }
 0x6bd   : > { %1567 = shalt.err (!%p1564_p12)
}
 0x6be   : > { %s1614_s26 = smov 128   ;;  %s1615_s29 = smov 8  }
 0x6bf   : > { %1394 = dma.vmem_to_hbm [thread:$0]  (%p1971_p9), %s1908_s28, 1024, %s1906_s12, %s1913_s25, %s1614_s26, %s1614_s26, %s1615_s29  }
 0x6c0 PF: > { %p1406_p2 = scmp.ge.s32.totalorder %s1606_s24, 2  ;;  %s1134_s10 = sand.u32 1, %s1594_s21  }
 0x6c1   : > { %p1972_p3 = scmp.ne.s32.totalorder %s1965_s8, 0  ;;  %s1135_s14 = scalar_lea.sflag [#allocation4], %s1134_s10 }
 0x6c3   : > { %p1401_p4 = pnand %p1406_p2, %p1972_p3 }
 0x6c5   : > { %1589 = dma.done.wait (!%p1401_p4), %s1135_s14, 1024  }
 0x6c6   : > { %1591 = vsyncadd (!%p1401_p4), %s1135_s14, 4294966272  ;;  %p17_p7 = scmp.ge.s32.totalorder %s1676_s27, 4   ;;  %s1973_s21 = smov %s1598_s22 }
 0x6c7   : > { %s1974_s22 = smov %s1602_s23  ;;  %s1975_s23 = smov %s1687_s30 }
 0x6c8   : > { %s1976_s24 = smov %s1676_s27  ;;  %19 = sbr.rel (!%p17_p7) target bundleno = 4 (0x4), region = 87 }
 0x6cf   :  { %1140 = vsyncpa [#allocation3], 1 }
 0x6d0   :  { %1142 = vsyncpa [#allocation3 + $0x1], 1 }
 0x6d1   :  { %1143 = vsyncpa [#allocation4], 1 }
 0x6d2   :  { %1145 = vsyncpa [#allocation4 + $0x1], 1 }

</bundles_post_ra>
